<compile_context>
chip_gen: v7x
topology: tpu7x:2x2x1
jax: 0.10.0
libtpu: 0.0.40
codegen_flags: <defaults>
</compile_context>

<pallas_src>
import jax
import jax.numpy as jnp
from jax.experimental import pallas as pl
from jax.experimental.pallas import tpu as pltpu


def _round_up(v, m):
    return (v + m - 1) // m * m


def gin_conv_kernel(a_ref, x_ref, w_ref, b_ref, o_ref):
    """One (tile_n, C_out_pad) output tile of GINConv2d.

    a_ref: (tile_n, N_pad)     A_hat rows = neighbor counts + (1+eps) on diag
    x_ref: (N_pad, C_pad)      node features of this batch element (channel-last)
    w_ref: (C_pad, C_out_pad)  1x1 conv weight
    b_ref: (1, C_out_pad)      bias (f32)
    o_ref: (tile_n, C_out_pad) output tile (f32)
    """
    # Aggregation (gather + sum over K + (1+eps)*x residual) folded into one
    # MXU matmul against the dense A_hat operator.
    h = jnp.dot(a_ref[...], x_ref[...], preferred_element_type=jnp.float32)
    # 1x1 conv == per-row matmul over channels, then bias + ReLU epilogue.
    y = jnp.dot(h.astype(w_ref.dtype), w_ref[...],
                preferred_element_type=jnp.float32)
    y = y + b_ref[...]
    o_ref[...] = jnp.maximum(y, 0.0)


def gin_conv2d_forward(x, edge_index, weight, bias, eps, *,
                       tile_nodes=512, compute_dtype=jnp.bfloat16):
    """GINConv2d forward.

    x:          (B, C, N, 1) float
    edge_index: (2, B, N, K) int   ([0] = neighbor indices)
    weight:     (C_out, C, 1, 1)   (PyTorch Conv2d layout)
    bias:       (C_out,)
    eps:        scalar
    returns:    (B, C_out, N, 1) float32
    """
    B, C, N, _ = x.shape
    C_out = weight.shape[0]
    assert weight.shape[1] == C
    assert tile_nodes % 128 == 0

    # --- Padded, lane-dense sizes (multiples of 128) --------------------------
    C_pad = _round_up(C, 128)
    C_out_pad = _round_up(C_out, 128)
    N_pad = _round_up(N, 128)
    tile_n = min(tile_nodes, N_pad)
    N_pad = _round_up(N_pad, tile_n)          # tile_n must divide N_pad
    n_tiles = N_pad // tile_n

    f32 = jnp.float32

    # --- Small wrapper glue (stays in XLA; no K-sized HBM blowup) -------------
    # Dense neighbor-count operator; folds gather + sum-over-K + (1+eps)*x.
    # Counts and (1+eps) are exactly representable in bf16 for ViG-scale K.
    nb = edge_index[0].astype(jnp.int32)                          # (B, N, K)
    adj = jax.nn.one_hot(nb, N_pad, dtype=f32).sum(axis=2)        # (B, N, N_pad)
    a_hat = adj + (1.0 + eps) * jnp.eye(N, N_pad, dtype=f32)[None]
    a_hat = jnp.pad(a_hat, ((0, 0), (0, N_pad - N), (0, 0)))      # (B, N_pad, N_pad)

    # Channel-last node features, zero padded (single transpose, no gather).
    x_rows = jnp.transpose(x[..., 0], (0, 2, 1)).astype(f32)      # (B, N, C)
    x_rows = jnp.pad(x_rows, ((0, 0), (0, N_pad - N), (0, C_pad - C)))

    w = weight[:, :, 0, 0].T.astype(f32)                          # (C, C_out)
    w = jnp.pad(w, ((0, C_pad - C), (0, C_out_pad - C_out)))
    b = jnp.pad(bias.astype(f32), (0, C_out_pad - C_out)).reshape(1, C_out_pad)

    a_hat = a_hat.astype(compute_dtype)
    x_rows = x_rows.astype(compute_dtype)
    w = w.astype(compute_dtype)

    grid = (B, n_tiles)

    out = pl.pallas_call(
        gin_conv_kernel,
        out_shape=jax.ShapeDtypeStruct((B, N_pad, C_out_pad), jnp.float32),
        grid_spec=pltpu.PrefetchScalarGridSpec(
            num_scalar_prefetch=0,
            grid=grid,
            in_specs=[
                # A_hat rows for this (batch, node-tile).
                pl.BlockSpec((None, tile_n, N_pad), lambda bb, i: (bb, i, 0)),
                # Full node-feature slab for this batch element (constant over
                # the inner node-tile axis -> not re-DMA'd between tiles).
                pl.BlockSpec((None, N_pad, C_pad), lambda bb, i: (bb, 0, 0)),
                # Weight / bias: constant index maps (loaded once).
                pl.BlockSpec((C_pad, C_out_pad), lambda bb, i: (0, 0)),
                pl.BlockSpec((1, C_out_pad), lambda bb, i: (0, 0)),
            ],
            out_specs=pl.BlockSpec((None, tile_n, C_out_pad),
                                   lambda bb, i: (bb, i, 0)),
        ),
        compiler_params=pltpu.CompilerParams(
            dimension_semantics=("parallel", "parallel")),
    )(a_hat, x_rows, w, b)

    out = out[:, :N, :C_out]                                      # drop padding
    return jnp.transpose(out, (0, 2, 1))[..., None]               # (B, C_out, N, 1)


def reference_forward(x, edge_index, weight, bias, eps):
    # Pure-JAX reference mirroring the PyTorch GINConv2d forward exactly.
    xsq = x[..., 0]                                               # (B, C, N)
    idx = edge_index[0]                                           # (B, N, K)
    x_j = jnp.take_along_axis(xsq[:, :, None, :], idx[:, None, :, :], axis=-1)
    x_j = jnp.sum(x_j, axis=-1, keepdims=True)                    # (B, C, N, 1)
    h = (1.0 + eps) * x + x_j
    w = weight[:, :, 0, 0]                                        # (C_out, C)
    y = jnp.einsum('bcnk,oc->bonk', h, w) + bias[None, :, None, None]
    return jnp.maximum(y, 0.0)                                    # (B, C_out, N, 1)


if __name__ == "__main__":
    B, C_in, C_out, N, K = 2, 4, 8, 16, 8

    key = jax.random.PRNGKey(0)
    kx, kidx, kw, kb = jax.random.split(key, 4)

    x = jax.random.normal(kx, (B, C_in, N, 1), dtype=jnp.float32)
    edge_index = jax.random.randint(kidx, (2, B, N, K), 0, N, dtype=jnp.int32)
    # Conv2d(C_in, C_out, 1, bias=True) parameters in PyTorch layout.
    weight = (jax.random.normal(kw, (C_out, C_in, 1, 1), dtype=jnp.float32)
              / jnp.sqrt(jnp.float32(C_in)))
    bias = jax.random.normal(kb, (C_out,), dtype=jnp.float32) * 0.1
    eps = 0.05   # learned parameter (eps_init = 0.0 in the module)

    ref = reference_forward(x, edge_index, weight, bias, eps)

    # Exact f32 path: proves semantic equivalence to the module.
    out_f32 = gin_conv2d_forward(x, edge_index, weight, bias, eps,
                                 compute_dtype=jnp.float32)
    out_f32 = jax.block_until_ready(out_f32)
    assert out_f32.shape == (B, C_out, N, 1), out_f32.shape
    assert jnp.allclose(out_f32, ref, atol=1e-4, rtol=1e-4), \
        float(jnp.max(jnp.abs(out_f32 - ref)))

    # bf16 MXU path (f32 accumulation): the production-speed configuration.
    out_bf16 = gin_conv2d_forward(x, edge_index, weight, bias, eps,
                                  compute_dtype=jnp.bfloat16)
    out_bf16 = jax.block_until_ready(out_bf16)
    assert out_bf16.shape == (B, C_out, N, 1), out_bf16.shape
    assert jnp.allclose(out_bf16, ref, atol=1e-1, rtol=1e-1), \
        float(jnp.max(jnp.abs(out_bf16 - ref)))

    print("KERNEL_OK")
</pallas_src>

<mosaic_0001>
module attributes {stable_mosaic.version = 11 : i64} {
  func.func @gin_conv_kernel(%arg0: i32, %arg1: i32, %arg2: memref<1x128x128xf32, #tpu.memory_space<vmem>>, %arg3: memref<1x128x128xf32, #tpu.memory_space<vmem>>, %arg4: memref<128x128xf32, #tpu.memory_space<vmem>>, %arg5: memref<1x128xf32, #tpu.memory_space<vmem>>, %arg6: memref<1x128x128xf32, #tpu.memory_space<vmem>>) attributes {dimension_semantics = [#tpu.dimension_semantics<parallel>, #tpu.dimension_semantics<parallel>], iteration_bounds = array<i64: 2, 1>, scalar_prefetch = 0 : i64, scratch_operands = 0 : i64, tpu.core_type = #tpu.core_type<tc>, window_params = [{transform_indices = @transform_0, window_bounds = array<i64: 1, 128, 128>}, {transform_indices = @transform_1, window_bounds = array<i64: 1, 128, 128>}, {pipeline_mode = #tpu.pipeline_mode<synchronous>, transform_indices = @transform_2, window_bounds = array<i64: 128, 128>}, {pipeline_mode = #tpu.pipeline_mode<synchronous>, transform_indices = @transform_3, window_bounds = array<i64: 1, 128>}, {transform_indices = @transform_4, window_bounds = array<i64: 1, 128, 128>}]} {
    %c0 = arith.constant 0 : index
    %c0_0 = arith.constant 0 : index
    %c0_1 = arith.constant 0 : index
    %0 = vector.load %arg2[%c0, %c0_0, %c0_1] : memref<1x128x128xf32, #tpu.memory_space<vmem>>, vector<1x128x128xf32>
    %1 = vector.shape_cast %0 : vector<1x128x128xf32> to vector<128x128xf32>
    %c0_2 = arith.constant 0 : index
    %c0_3 = arith.constant 0 : index
    %c0_4 = arith.constant 0 : index
    %2 = vector.load %arg3[%c0_2, %c0_3, %c0_4] : memref<1x128x128xf32, #tpu.memory_space<vmem>>, vector<1x128x128xf32>
    %3 = vector.shape_cast %2 : vector<1x128x128xf32> to vector<128x128xf32>
    %cst = arith.constant dense<0.000000e+00> : vector<128x128xf32>
    %4 = tpu.matmul %1, %3, %cst {dimension_numbers = #tpu.dot_dimension_numbers<[1], [0], [0], [1], [0, 0, 1, 1], [], []>} : vector<128x128xf32>, vector<128x128xf32>, vector<128x128xf32> -> vector<128x128xf32>
    %c0_5 = arith.constant 0 : index
    %c0_6 = arith.constant 0 : index
    %5 = vector.load %arg4[%c0_5, %c0_6] : memref<128x128xf32, #tpu.memory_space<vmem>>, vector<128x128xf32>
    %cst_7 = arith.constant dense<0.000000e+00> : vector<128x128xf32>
    %6 = tpu.matmul %4, %5, %cst_7 {dimension_numbers = #tpu.dot_dimension_numbers<[1], [0], [0], [1], [0, 0, 1, 1], [], []>} : vector<128x128xf32>, vector<128x128xf32>, vector<128x128xf32> -> vector<128x128xf32>
    %c0_8 = arith.constant 0 : index
    %c0_9 = arith.constant 0 : index
    %7 = vector.load %arg5[%c0_8, %c0_9] : memref<1x128xf32, #tpu.memory_space<vmem>>, vector<1x128xf32>
    %8 = vector.broadcast %7 : vector<1x128xf32> to vector<128x128xf32>
    %9 = arith.addf %6, %8 : vector<128x128xf32>
    %cst_10 = arith.constant 0.000000e+00 : f32
    %10 = vector.broadcast %cst_10 : f32 to vector<128x128xf32>
    %11 = arith.maximumf %9, %10 : vector<128x128xf32>
    %c0_11 = arith.constant 0 : index
    %c0_12 = arith.constant 0 : index
    %c0_13 = arith.constant 0 : index
    %12 = vector.load %arg6[%c0_11, %c0_12, %c0_13] : memref<1x128x128xf32, #tpu.memory_space<vmem>>, vector<1x128x128xf32>
    %13 = vector.shape_cast %12 : vector<1x128x128xf32> to vector<128x128xf32>
    %14 = vector.shape_cast %11 : vector<128x128xf32> to vector<1x128x128xf32>
    tpu.vector_store %arg6[%c0_11, %c0_12, %c0_13], %14 {strides = array<i32>} : memref<1x128x128xf32, #tpu.memory_space<vmem>>, vector<1x128x128xf32>,
    return
  }
  func.func @transform_0(%arg0: i32, %arg1: i32) -> (i32, i32, i32) {
    %c0_i32 = arith.constant 0 : i32
    %c0_i32_0 = arith.constant 0 : i32
    return %arg0, %arg1, %c0_i32 : i32, i32, i32
  }
  func.func @transform_1(%arg0: i32, %arg1: i32) -> (i32, i32, i32) {
    %c0_i32 = arith.constant 0 : i32
    %c0_i32_0 = arith.constant 0 : i32
    %c0_i32_1 = arith.constant 0 : i32
    return %arg0, %c0_i32, %c0_i32_0 : i32, i32, i32
  }
  func.func @transform_2(%arg0: i32, %arg1: i32) -> (i32, i32) {
    %c0_i32 = arith.constant 0 : i32
    %c0_i32_0 = arith.constant 0 : i32
    %c0_i32_1 = arith.constant 0 : i32
    return %c0_i32, %c0_i32_0 : i32, i32
  }
  func.func @transform_3(%arg0: i32, %arg1: i32) -> (i32, i32) {
    %c0_i32 = arith.constant 0 : i32
    %c0_i32_0 = arith.constant 0 : i32
    %c0_i32_1 = arith.constant 0 : i32
    return %c0_i32, %c0_i32_0 : i32, i32
  }
  func.func @transform_4(%arg0: i32, %arg1: i32) -> (i32, i32, i32) {
    %c0_i32 = arith.constant 0 : i32
    %c0_i32_0 = arith.constant 0 : i32
    return %arg0, %arg1, %c0_i32 : i32, i32, i32
  }
}

</mosaic_0001>

<bundles_post_ra>
// kernel: tpu_custom_call.1
= control target key start
LH: loop header
LB: loop body
LE: loop exit
PB: predicated region body
PF: predicated region fallthrough
CT: control target
= control target key end

     0   :  { %s1709_s0 = inlined_call_operand.hbm [shape: f32[2,128,128], index: 0, kind: input, shape index: {}]   ;;  %s1710_s1 = inlined_call_operand.hbm [shape: f32[2,128,128], index: 1, kind: input, shape index: {}]   ;;  %s1711_s2 = inlined_call_operand.hbm [shape: f32[128,128], index: 2, kind: input, shape index: {}]   ;;  %s1712_s3 = inlined_call_operand.vmem [shape: f32[1,128], index: 3, kind: input, shape index: {}]   ;;  %s1713_s4 = inlined_call_operand.hbm [shape: f32[2,128,128], index: 4, kind: output, shape index: {}]  }
   0x1   :  { %1722 = sst [smem:[#allocation14_spill]] %s1709_s0 }
   0x2   :  { %1723 = sst [smem:[#allocation15_spill]] %s1711_s2 }
   0x3   :  { %9 = vsyncpa [#allocation3], 0 }
   0x4   :  { %11 = vsyncpa [#allocation3 + $0x1], 0 }
   0x5   :  { %12 = vsyncpa [#allocation6], 0 }
   0x6   :  { %14 = vsyncpa [#allocation6 + $0x1], 0 }
   0x7   :  { %15 = vsyncpa [#allocation4], 0 }
   0x8   :  { %17 = vsyncpa [#allocation4 + $0x1], 0  ;;  %s1362_s15 = smov 0   ;;  %s1364_s16 = smov 0  }
   0x9   :  { %s1366_s17 = smov 0   ;;  %s1368_s18 = smov 0  }
   0xa   :  { %s1370_s19 = smov 0   ;;  %s1372_s20 = smov 0  }
   0xb LB: > { %s1393_s21 = sadd.s32 4294967295, %s1327_s20   ;;  %s803_s22 = sadd.s32 4294967294, %s1327_s20   ;;  %s1327_s20 = sphi %s1372_s20, %s23_s20   ;;  %s1323_s19 = sphi %s1370_s19, %s1748_s19   ;;  %s1319_s18 = sphi %s1368_s18, %s1747_s18   ;;  %s1315_s17 = sphi %s1366_s17, %s1746_s17   ;;  %s1311_s16 = sphi %s1364_s16, %s1745_s16   ;;  %s1307_s15 = sphi %s1362_s15, %s1744_s15  }
   0xc   : > { %p57_p0 = scmp.ne.s32.totalorder %s1311_s16, %s1307_s15  ;;  %p1714_p1 = scmp.eq.s32.totalorder %s1393_s21, 0 }
   0xd   : > { %p157_p3 = scmp.eq.s32.totalorder %s803_s22, 1  ;;  %p804_p5 = scmp.ge.s32.totalorder %s1327_s20, 1 }
   0xe   : > { %p1402_p4 = por %p1714_p1, %p57_p0  ;;  %p164_p7 = scmp.lt.s32.totalorder %s1327_s20, 3 }
   0xf   : > { %p1407_p6 = por %p157_p3, %p57_p0  ;;  %s1329_s26 = smov [#allocation7]  }
  0x10   : > { %s1724_s23 = scalar_select %p1402_p4, 1, 0 }
  0x11   : > { %s1725_s24 = scalar_select %p1407_p6, 1, 0 }
  0x12   : > { %p1412_p8 = pnand %p804_p5, %p164_p7  ;;  %s176_s27 = sshll.u32 %s1329_s26, 4  ;;  %s177_s27 = int_to_ptr.vmem [resolvable:$true] %s176_s27 }
  0x13   : > { %s35_s29 = sadd.s32 1, %s1323_s19  ;;  %s1728_s2 = sld [smem:[#allocation15_spill]] }
  0x14   : > { %s1726_s25 = scalar_select %p1412_p8, 1, 0 }
  0x15   : > { %p1077_p9 = pneg %p1412_p8 }
  0x17   : > { %p1421_p11 = pnand %p1077_p9, %p1714_p1 }
  0x19   : > { %s1149_s6 = scalar_lea.hbm %s1728_s2, 2048  ;;  %p1151_p13 = pneg %p1421_p11 }
  0x1a   : > { %p1150_p12 = scmp.ne.s32.totalorder %s1728_s2, %s1149_s6  ;;  %p1156_p5 = scmp.lt.u32.totalorder %s1149_s6, %s1728_s2 }
  0x1c   : > { %p1152_p0 = pnand %p1151_p13, %p1150_p12 }
  0x1e   : > { %p1153_p3 = pneg %p1152_p0 }
  0x20   : > { %p1158_p7 = pnand %p1156_p5, %p1153_p3 }
  0x22   : > { %1161 = shalt.err (!%p1158_p7)
}
  0x23   : > { %s1162_s11 = scalar_lea.vmem %s177_s27, 2048  ;;  %p1170_p2 = scmp.lt.s32.totalorder %s177_s27, %s177_s27 }
  0x24   : > { %p1163_p9 = scmp.ne.s32.totalorder %s177_s27, %s1162_s11  ;;  %p1171_p6 = scmp.lt.s32.totalorder %s1162_s11, %s1162_s11 }
  0x26   : > { %p1165_p10 = pnand %p1163_p9, %p1151_p13  ;;  %p1172_p4 = por %p1171_p6, %p1170_p2 }
  0x28   : > { %p1166_p1 = pneg %p1165_p10 }
  0x2a   : > { %p1173_p8 = pnand %p1172_p4, %p1166_p1 }
  0x2c   : > { %1176 = shalt.err (!%p1173_p8)
}
  0x2d   : > { %s1717_s12 = smov 128   ;;  %s1719_s13 = smov 8  }
  0x2e   : > { %1080 = dma.hbm_to_vmem [thread:$0]  (!%p1421_p11), %s1728_s2, 2048, %s177_s27, [#allocation6], %s1717_s12, %s1717_s12, %s1719_s13  }
  0x2f   : > { %p37_p1 = scmp.ge.s32.totalorder %s35_s29, 2  ;;  %s44_s26 = sadd.s32 1, %s1315_s17 }
  0x30   : > { %p51_p2 = scmp.ne.s32.totalorder %s1315_s17, %s1311_s16  ;;  %p52_p4 = scmp.eq.s32.totalorder %s1327_s20, 0 }
  0x31   : > { %s1750_s29 = smov (%p37_p1, %s35_s29), 0  ;;  %p1731_p8 = scmp.eq.s32.totalorder %s1393_s21, 1 }
  0x32   : > { %1729 = sst [smem:[#allocation13_spill]] %s1750_s29  ;;  %p1451_p6 = por %p52_p4, %p51_p2 }
  0x33   : > { %p1457_p10 = por %p1731_p8, %p51_p2  ;;  %s39_s5 = ssub.s32 %s1323_s19, %s1750_s29 }
  0x34   : > { %p1093_p12 = scmp.lt.s32.totalorder %s1327_s20, 2  ;;  %p42_p11 = scmp.eq.s32.totalorder %s39_s5, 0 }
  0x35   : > { %s193_s27 = sand.u32 1, %s1315_s17   ;;  %s824_s8 = sshll.u32 %s1323_s19, 11 }
  0x36   : > { %s807_s6 = sshll.u32 %s193_s27, 7  ;;  %s1733_s0 = sld [smem:[#allocation14_spill]] }
  0x37   : > { %s1466_s7 = scalar_select %p42_p11, %s1315_s17, %s44_s26  }
  0x38   : > { %s197_s14 = scalar_lea.vmem [#allocation2], %s807_s6  ;;  %p1478_p13 = pnand %p1093_p12, %p1451_p6 }
  0x39   : > { %s206_s22 = sshll.u32 %s197_s14, 4  ;;  %s1485_s9 = scalar_lea.hbm %s1710_s1, %s824_s8  ;;  %s1474_s22 = int_to_ptr.vmem [resolvable:$true] %s206_s22 }
  0x3a   : > { %s220_s10 = scalar_lea.vmem [#allocation5], %s807_s6  ;;  %s1489_s2 = scalar_lea.sflag [#allocation3], %s193_s27 }
  0x3b   : > { %s1487_s13 = sshll.u32 %s220_s10, 4  ;;  %p1179_p3 = pneg %p1478_p13  ;;  %s1521_s13 = int_to_ptr.vmem [resolvable:$true] %s1487_s13 }
  0x3c   : > { %s1472_s11 = scalar_lea.hbm %s1733_s0, %s824_s8  ;;  %s1182_s12 = scalar_lea.hbm %s1733_s0, 4096 }
  0x3d   : > { %s1177_s14 = scalar_lea.hbm %s1472_s11, 2048  ;;  %p1183_p9 = scmp.lt.u32.totalorder %s1472_s11, %s1733_s0 }
  0x3e   : > { %p1178_p0 = scmp.ne.s32.totalorder %s1472_s11, %s1177_s14  ;;  %p1184_p1 = scmp.lt.u32.totalorder %s1182_s12, %s1177_s14 }
  0x3f   : > { %p1186_p4 = scmp.lt.u32.totalorder %s1177_s14, %s1472_s11 }
  0x40   : > { %p1180_p5 = pnand %p1179_p3, %p1178_p0  ;;  %p1185_p2 = por %p1184_p1, %p1183_p9 }
  0x42   : > { %p1181_p7 = pneg %p1180_p5  ;;  %p1187_p6 = por %p1186_p4, %p1185_p2 }
  0x44   : > { %p1188_p8 = pnand %p1187_p6, %p1181_p7 }
  0x46   : > { %1191 = shalt.err (!%p1188_p8)
}
  0x47   : > { %s1192_s27 = scalar_lea.vmem %s1474_s22, 2048  ;;  %s1332_s29 = smov [#allocation2]  }
  0x48   : > { %p1193_p12 = scmp.ne.s32.totalorder %s1474_s22, %s1192_s27  ;;  %s1197_s6 = sshll.u32 %s1332_s29, 4  ;;  %s1198_s6 = int_to_ptr.vmem [resolvable:$false] %s1197_s6 }
  0x49   : > { %s1199_s10 = scalar_lea.vmem %s1198_s6, 4096  ;;  %p1200_p5 = scmp.lt.s32.totalorder %s1474_s22, %s1198_s6 }
  0x4a   : > { %p1195_p11 = pnand %p1193_p12, %p1179_p3  ;;  %p1201_p9 = scmp.lt.s32.totalorder %s1199_s10, %s1192_s27 }
  0x4c   : > { %p1196_p0 = pneg %p1195_p11  ;;  %p1202_p1 = por %p1201_p9, %p1200_p5 }
  0x4e   : > { %p1203_p2 = pnand %p1202_p1, %p1196_p0 }
  0x50   : > { %1206 = shalt.err (!%p1203_p2)
}
  0x51   : > { %s1735_s14 = smov 8   ;;  %s1736_s30 = smov 128  }
  0x52   : > { %1084 = dma.hbm_to_vmem [thread:$0]  (!%p1478_p13), %s1472_s11, 2048, %s1474_s22, %s1489_s2, %s1736_s30, %s1736_s30, %s1735_s14  }
  0x53   : > { %s216_s12 = sand.u32 1, %s1327_s20   ;;  %s1207_s8 = scalar_lea.hbm %s1485_s9, 2048 }
  0x54   : > { %s1524_s26 = scalar_lea.sflag [#allocation6], %s216_s12  ;;  %p1208_p7 = scmp.ne.s32.totalorder %s1485_s9, %s1207_s8 }
  0x55   : > { %s1212_s6 = scalar_lea.hbm %s1710_s1, 4096  ;;  %p1213_p8 = scmp.lt.u32.totalorder %s1485_s9, %s1710_s1 }
  0x56   : > { %p1210_p4 = pnand %p1208_p7, %p1179_p3  ;;  %p1214_p12 = scmp.lt.u32.totalorder %s1212_s6, %s1207_s8 }
  0x57   : > { %p1216_p0 = scmp.lt.u32.totalorder %s1207_s8, %s1485_s9 }
  0x58   : > { %p1211_p6 = pneg %p1210_p4  ;;  %p1215_p11 = por %p1214_p12, %p1213_p8 }
  0x5a   : > { %p1217_p5 = por %p1216_p0, %p1215_p11 }
  0x5c   : > { %p1218_p9 = pnand %p1217_p5, %p1211_p6 }
  0x5e   : > { %1221 = shalt.err (!%p1218_p9)
}
  0x5f   : > { %s1222_s2 = scalar_lea.vmem %s1521_s13, 2048  ;;  %s1333_s11 = smov [#allocation5]  }
  0x60   : > { %p1223_p1 = scmp.ne.s32.totalorder %s1521_s13, %s1222_s2  ;;  %s1227_s22 = sshll.u32 %s1333_s11, 4  ;;  %s1228_s22 = int_to_ptr.vmem [resolvable:$false] %s1227_s22 }
  0x61   : > { %s1229_s0 = scalar_lea.vmem %s1228_s22, 4096  ;;  %p1230_p4 = scmp.lt.s32.totalorder %s1521_s13, %s1228_s22 }
  0x62   : > { %p1225_p2 = pnand %p1223_p1, %p1179_p3  ;;  %p1231_p8 = scmp.lt.s32.totalorder %s1229_s0, %s1222_s2 }
  0x64   : > { %p1226_p7 = pneg %p1225_p2  ;;  %p1232_p12 = por %p1231_p8, %p1230_p4 }
  0x66   : > { %p1233_p11 = pnand %p1232_p12, %p1226_p7 }
  0x68   : > { %1236 = shalt.err (!%p1233_p11)
}
  0x69   : > { %1087 = dma.hbm_to_vmem [thread:$0]  (!%p1478_p13), %s1485_s9, 2048, %s1521_s13, %s1524_s26, %s1736_s30, %s1736_s30, %s1735_s14  }
  0x6a   : > { %p1737_p3 = scmp.ne.s32.totalorder %s1726_s25, 0 }
  0x6b   : > { %s1556_s12 = sand.u32 (!%p1737_p3), 1, %s1311_s16   ;;  %p1738_p6 = scmp.ne.s32.totalorder (!%p1737_p3), %s1724_s23, 0 }
  0x6c   : > { %239 = sbr.rel (%p1737_p3) target bundleno = 631 (0x277), region = 36  ;;  %s1559_s8 = sshll.u32 (!%p1737_p3), %s1556_s12, 7 }
  0x6d   : > { %s242_s5 = scalar_lea.sflag (!%p1737_p3), [#allocation3], %s1556_s12  ;;  %s1563_s27 = scalar_lea.vmem (!%p1737_p3), [#allocation2], %s1559_s8 }
  0x73   : > { %1290 = dma.done.wait (%p1738_p6), %s242_s5, 2048  }
  0x74   : > { %1292 = vsyncadd (%p1738_p6), %s242_s5, 4294965248  ;;  %s250_s25 = sand.u32 1, %s1393_s21   ;;  %s1571_s9 = scalar_lea.vmem [#allocation5], %s1559_s8 }
  0x75   : > { %s251_s13 = scalar_lea.sflag [#allocation6], %s250_s25 }
  0x76   : > { %1294 = dma.done.wait (%p1738_p6), %s251_s13, 2048  }
  0x77   : > { %1296 = vsyncadd (%p1738_p6), %s251_s13, 4294965248  ;;  %p1739_p13 = scmp.eq.s32.totalorder %s1393_s21, 0 }
  0x79   : > { %1298 = dma.done.wait (%p1739_p13), [#allocation6], 2048   ;;  %p1740_p0 = pmov %p1739_p13 }
  0x7a   : > { %v306_v0 = vld [vmem:[%s1571_s9] sm:$0xff]  ;;  %v307_v1 = vld [vmem:[%s1571_s9 + $0x8] sm:$0xff]  ;;  %v308_v2 = vld [vmem:[%s1571_s9 + $0x10] sm:$0xff]  ;;  %s1621_s14 = scalar_lea.vmem [#allocation8], %s1559_s8  ;;  %s826_s30 = sshll.u32 %s1319_s18, 11 }
  0x7b   : > { %1300 = vsyncadd (%p1740_p0), [#allocation6], 4294965248  ;;  %v1003_v3 = vpack.c.bf16 %v307_v1, %v306_v0  ;;  %v309_v4 = vld [vmem:[%s1571_s9 + $0x18] sm:$0xff]  ;;  %v310_v6 = vld [vmem:[%s1571_s9 + $0x20] sm:$0xff]  ;;  %s683_s26 = sshll.u32 %s1621_s14, 4  ;;  %s1656_s10 = scalar_lea.hbm %s1713_s4, %s826_s30  ;;  %s1658_s26 = int_to_ptr.vmem [resolvable:$true] %s683_s26 }
  0x7c   : > { %v1007_v5 = vpack.c.bf16 %v309_v4, %v308_v2  ;;  %v311_v7 = vld [vmem:[%s1571_s9 + $0x28] sm:$0xff]  ;;  %v290_v9 = vld [vmem:[%s1563_s27] sm:$0xff]  ;;  %v312_v10 = vld [vmem:[%s1571_s9 + $0x30] sm:$0xff]  ;;  %s668_s18 = scalar_lea.sflag [#allocation4], %s1556_s12  ;;  %s1237_s2 = scalar_lea.vmem %s1658_s26, 2048 }
  0x7d   : > { %1004 = vmatprep.subr.bf16.mxu0 %v1003_v3  ;;  %v1011_v8 = vpack.c.bf16 %v311_v7, %v310_v6  ;;  %v313_v11 = vld [vmem:[%s1571_s9 + $0x38] sm:$0xff]  ;;  %923 = vmatprep.mubr.f32.mxu0 %v290_v9  ;;  %v314_v13 = vld [vmem:[%s1571_s9 + $0x40] sm:$0xff]  ;;  %v315_v14 = vld [vmem:[%s1571_s9 + $0x48] sm:$0xff]  ;;  %p1238_p5 = scmp.ne.s32.totalorder %s1658_s26, %s1237_s2  ;;  %s1334_s11 = smov [#allocation8]  }
  0x7e   : > { %1006 = vmatpush3.bf16.msra.mxu0 %v1003_v3  ;;  %v1015_v12 = vpack.c.bf16 %v313_v11, %v312_v10  ;;  %v467_v15 = vld [vmem:[#allocation7] sm:$0xff]  ;;  %v468_v16 = vld [vmem:[#allocation7 + $0x8] sm:$0xff]  ;;  %v469_v17 = vld [vmem:[#allocation7 + $0x10] sm:$0xff]  ;;  %v1019_v21 = vpack.c.bf16 %v315_v14, %v314_v13  ;;  %s1241_s22 = sshll.u32 %s1334_s11, 4  ;;  %s1242_s22 = int_to_ptr.vmem [resolvable:$false] %s1241_s22 }
  0x7f   : > { %1008 = vmatprep.subr.bf16.mxu0 %v1007_v5  ;;  %v470_v18 = vld [vmem:[#allocation7 + $0x18] sm:$0xff]  ;;  %v1035_v19 = vpack.c.bf16 %v468_v16, %v467_v15  ;;  %v471_v22 = vld [vmem:[#allocation7 + $0x20] sm:$0xff]  ;;  %v472_v23 = vld [vmem:[#allocation7 + $0x28] sm:$0xff]  ;;  %p1239_p9 = pnand %p1238_p5, %p1457_p10  ;;  %s1243_s0 = scalar_lea.vmem %s1242_s22, 4096 }
  0x80   : > { %v1039_v20 = vpack.c.bf16 %v470_v18, %v469_v17  ;;  %v316_v24 = vld [vmem:[%s1571_s9 + $0x50] sm:$0xff]  ;;  %v317_v25 = vld [vmem:[%s1571_s9 + $0x58] sm:$0xff]  ;;  %v1043_v26 = vpack.c.bf16 %v472_v23, %v471_v22  ;;  %v318_v30 = vld [vmem:[%s1571_s9 + $0x60] sm:$0xff]  ;;  %p1244_p2 = scmp.lt.s32.totalorder %s1658_s26, %s1242_s22  ;;  %p1245_p7 = scmp.lt.s32.totalorder %s1243_s0, %s1237_s2 }
  0x81   : > { %1036 = vmatprep.subr.bf16.mxu1 %v1035_v19  ;;  %v1023_v27 = vpack.c.bf16 %v317_v25, %v316_v24  ;;  %v473_v28 = vld [vmem:[#allocation7 + $0x30] sm:$0xff]  ;;  %v474_v29 = vld [vmem:[#allocation7 + $0x38] sm:$0xff]  ;;  %v319_v31 = vld [vmem:[%s1571_s9 + $0x68] sm:$0xff]  ;;  %p1240_p1 = pneg %p1239_p9 }
  0x82   : > { %1010 = vmatpush3.bf16.msra.mxu0 %v1007_v5  ;;  %1038 = vmatpush3.bf16.msra.mxu1 %v1035_v19  ;;  %v1047_v32 = vpack.c.bf16 %v474_v29, %v473_v28  ;;  %v1027_v33 = vpack.c.bf16 %v319_v31, %v318_v30  ;;  %v475_v34 = vld [vmem:[#allocation7 + $0x40] sm:$0xff]  ;;  %v476_v35 = vld [vmem:[#allocation7 + $0x48] sm:$0xff]  ;;  %v320_v36 = vld [vmem:[%s1571_s9 + $0x70] sm:$0xff]  ;;  %p1246_p4 = por %p1245_p7, %p1244_p2 }
  0x83   : > { %1012 = vmatprep.subr.bf16.mxu0 %v1011_v8  ;;  %1040 = vmatprep.subr.bf16.mxu1 %v1039_v20  ;;  %v321_v37 = vld [vmem:[%s1571_s9 + $0x78] sm:$0xff]  ;;  %v1051_v38 = vpack.c.bf16 %v476_v35, %v475_v34  ;;  %v477_v40 = vld [vmem:[#allocation7 + $0x50] sm:$0xff]  ;;  %v479_v43 = vld [vmem:[#allocation7 + $0x60] sm:$0xff] }
  0x84   : > { %v1031_v39 = vpack.c.bf16 %v321_v37, %v320_v36  ;;  %v478_v41 = vld [vmem:[#allocation7 + $0x58] sm:$0xff]  ;;  %v480_v44 = vld [vmem:[#allocation7 + $0x68] sm:$0xff]  ;;  %v292_v47 = vld [vmem:[%s1563_s27 + $0x10] sm:$0xff]  ;;  %p1247_p8 = pnand %p1246_p4, %p1240_p1 }
  0x85   : > { %v1055_v42 = vpack.c.bf16 %v478_v41, %v477_v40  ;;  %v291_v45 = vld [vmem:[%s1563_s27 + $0x8] sm:$0xff]  ;;  %v1059_v46 = vpack.c.bf16 %v480_v44, %v479_v43  ;;  %v481_v48 = vld [vmem:[#allocation7 + $0x70] sm:$0xff]  ;;  %v482_v49 = vld [vmem:[#allocation7 + $0x78] sm:$0xff] }
  0x86   : > { %1014 = vmatpush3.bf16.msra.mxu0 %v1011_v8  ;;  %1042 = vmatpush3.bf16.msra.mxu1 %v1039_v20  ;;  %v293_v50 = vld [vmem:[%s1563_s27 + $0x18] sm:$0xff]  ;;  %v1063_v51 = vpack.c.bf16 %v482_v49, %v481_v48  ;;  %v294_v52 = vld [vmem:[%s1563_s27 + $0x20] sm:$0xff]  ;;  %v295_v53 = vld [vmem:[%s1563_s27 + $0x28] sm:$0xff] }
  0x87   : > { %1016 = vmatprep.subr.bf16.mxu0 %v1015_v12  ;;  %1044 = vmatprep.subr.bf16.mxu1 %v1043_v26  ;;  %v296_v54 = vld [vmem:[%s1563_s27 + $0x30] sm:$0xff]  ;;  %v297_v55 = vld [vmem:[%s1563_s27 + $0x38] sm:$0xff]  ;;  %v298_v56 = vld [vmem:[%s1563_s27 + $0x40] sm:$0xff] }
  0x88   : > { %v299_v57 = vld [vmem:[%s1563_s27 + $0x48] sm:$0xff]  ;;  %v300_v58 = vld [vmem:[%s1563_s27 + $0x50] sm:$0xff]  ;;  %v301_v59 = vld [vmem:[%s1563_s27 + $0x58] sm:$0xff] }
  0x89   : > { %v302_v60 = vld [vmem:[%s1563_s27 + $0x60] sm:$0xff]  ;;  %v303_v61 = vld [vmem:[%s1563_s27 + $0x68] sm:$0xff]  ;;  %v304_v62 = vld [vmem:[%s1563_s27 + $0x70] sm:$0xff] }
  0x8a   : > { %1018 = vmatpush3.bf16.msra.mxu0 %v1015_v12  ;;  %1046 = vmatpush3.bf16.msra.mxu1 %v1043_v26  ;;  %v305_v63 = vld [vmem:[%s1563_s27 + $0x78] sm:$0xff]  ;;  %v1616_v16 = vld [vmem:[%s1712_s3] ss:$0 sm:$0xff] }
  0x8b   : > { %1020 = vmatprep.subr.bf16.mxu0 %v1019_v21  ;;  %1048 = vmatprep.subr.bf16.mxu1 %v1047_v32 }
  0x8e   : > { %1022 = vmatpush3.bf16.msra.mxu0 %v1019_v21  ;;  %1050 = vmatpush3.bf16.msra.mxu1 %v1047_v32 }
  0x8f   : > { %1024 = vmatprep.subr.bf16.mxu0 %v1023_v27  ;;  %1052 = vmatprep.subr.bf16.mxu1 %v1051_v38 }
  0x92   : > { %1026 = vmatpush3.bf16.msra.mxu0 %v1023_v27  ;;  %1054 = vmatpush3.bf16.msra.mxu1 %v1051_v38 }
  0x93   : > { %1028 = vmatprep.subr.bf16.mxu0 %v1027_v33  ;;  %1056 = vmatprep.subr.bf16.mxu1 %v1055_v42 }
  0x96   : > { %1030 = vmatpush3.bf16.msra.mxu0 %v1027_v33  ;;  %1058 = vmatpush3.bf16.msra.mxu1 %v1055_v42 }
  0x97   : > { %1032 = vmatprep.subr.bf16.mxu0 %v1031_v39  ;;  %1060 = vmatprep.subr.bf16.mxu1 %v1059_v46 }
  0x9a   : > { %1034 = vmatpush3.bf16.msra.mxu0 %v1031_v39  ;;  %1062 = vmatpush3.bf16.msra.mxu1 %v1059_v46 }
  0x9b   : > { %1064 = vmatprep.subr.bf16.mxu1 %v1063_v51 }
  0x9d   : > { %924 = vmatmul.mubr.f32.vlgmr.msra.gmra.mrb[0].mxu0 %v291_v45 }
  0x9e   : > { %926 = vmatprep.mubr.f32.mxu0 %v292_v47  ;;  %1066 = vmatpush3.bf16.msra.mxu1 %v1063_v51 }
  0xa1   : > { %927 = vmatmul.mubr.f32.gmra.mrb[2].mxu0 %v293_v50 }
  0xa2   : > { %929 = vmatprep.mubr.f32.mxu0 %v294_v52 }
  0xa5   : > { %930 = vmatmul.mubr.f32.gmra.mrb[4].mxu0 %v295_v53 }
  0xa6   : > { %932 = vmatprep.mubr.f32.mxu0 %v296_v54 }
  0xa9   : > { %933 = vmatmul.mubr.f32.gmra.mrb[6].mxu0 %v297_v55 }
  0xaa   : > { %935 = vmatprep.mubr.f32.mxu0 %v298_v56 }
  0xad   : > { %936 = vmatmul.mubr.f32.gmra.mrb[8].mxu0 %v299_v57 }
  0xae   : > { %938 = vmatprep.mubr.f32.mxu0 %v300_v58 }
  0xb1   : > { %939 = vmatmul.mubr.f32.gmra.mrb[10].mxu0 %v301_v59 }
  0xb2   : > { %941 = vmatprep.mubr.f32.mxu0 %v302_v60 }
  0xb5   : > { %942 = vmatmul.mubr.f32.gmra.mrb[12].mxu0 %v303_v61 }
  0xb6   : > { %944 = vmatprep.mubr.f32.mxu0 %v304_v62 }
  0xb9   : > { %945 = vmatmul.mubr.f32.gmra.mrb[14].mxu0 %v305_v63 }
 0x170   : > { %v925_v0 = vpop.f32.mrb[0].mxu0 }
 0x171   : > { %v388_v1 = vpop.f32.mrb[1].mxu0 }
 0x172   : > { %979 = vmatprep.mubr.f32.mxu1 %v388_v1 }
 0x173   : > { %980 = vmatmul.mubr.f32.vlgmr.msra.gmra.mrb[0].mxu1 %v925_v0 }
 0x174   : > { %v928_v2 = vpop.f32.mrb[2].mxu0 }
 0x175   : > { %v398_v3 = vpop.f32.mrb[3].mxu0 }
 0x176   : > { %982 = vmatprep.mubr.f32.mxu1 %v398_v3 }
 0x177   : > { %983 = vmatmul.mubr.f32.gmra.mrb[2].mxu1 %v928_v2 }
 0x178   : > { %v931_v4 = vpop.f32.mrb[4].mxu0 }
 0x179   : > { %v408_v5 = vpop.f32.mrb[5].mxu0 }
 0x17a   : > { %985 = vmatprep.mubr.f32.mxu1 %v408_v5 }
 0x17b   : > { %986 = vmatmul.mubr.f32.gmra.mrb[4].mxu1 %v931_v4 }
 0x17c   : > { %v934_v6 = vpop.f32.mrb[6].mxu0 }
 0x17d   : > { %v418_v7 = vpop.f32.mrb[7].mxu0 }
 0x17e   : > { %988 = vmatprep.mubr.f32.mxu1 %v418_v7 }
 0x17f   : > { %989 = vmatmul.mubr.f32.gmra.mrb[6].mxu1 %v934_v6 }
 0x180   : > { %v937_v8 = vpop.f32.mrb[8].mxu0 }
 0x181   : > { %v428_v9 = vpop.f32.mrb[9].mxu0 }
 0x182   : > { %991 = vmatprep.mubr.f32.mxu1 %v428_v9 }
 0x183   : > { %992 = vmatmul.mubr.f32.gmra.mrb[8].mxu1 %v937_v8 }
 0x184   : > { %v940_v10 = vpop.f32.mrb[10].mxu0 }
 0x185   : > { %v438_v11 = vpop.f32.mrb[11].mxu0 }
 0x186   : > { %994 = vmatprep.mubr.f32.mxu1 %v438_v11 }
 0x187   : > { %995 = vmatmul.mubr.f32.gmra.mrb[10].mxu1 %v940_v10 }
 0x188   : > { %v943_v12 = vpop.f32.mrb[12].mxu0 }
 0x189   : > { %v448_v13 = vpop.f32.mrb[13].mxu0 }
 0x18a   : > { %997 = vmatprep.mubr.f32.mxu1 %v448_v13 }
 0x18b   : > { %998 = vmatmul.mubr.f32.gmra.mrb[12].mxu1 %v943_v12 }
 0x18c   : > { %v946_v14 = vpop.f32.mrb[14].mxu0 }
 0x18d   : > { %v458_v15 = vpop.f32.mrb[15].mxu0 }
 0x18e   : > { %1000 = vmatprep.mubr.f32.mxu1 %v458_v15 }
 0x18f   : > { %1001 = vmatmul.mubr.f32.gmra.mrb[14].mxu1 %v946_v14 }
 0x246   : > { %v981_v17 = vpop.f32.mrb[0].mxu1 }
 0x247   : > { %v562_v18 = vadd.f32 %v981_v17, %v1616_v16  ;;  %v556_v19 = vpop.f32.mrb[1].mxu1 }
 0x248   : > { %v557_v20 = vadd.f32 %v1616_v16, %v556_v19 }
 0x249   : > { %v636_v21 = vmax.f32 %v562_v18, 0.0 }
 0x24a   : > { %v635_v22 = vmax.f32 %v557_v20, 0.0  ;;  %v984_v23 = vpop.f32.mrb[2].mxu1 }
 0x24b   : > { %652 = vst [vmem:[%s1621_s14 + $0x8] sm:$0xff] %v636_v21  ;;  %v572_v24 = vadd.f32 %v984_v23, %v1616_v16  ;;  %v566_v25 = vpop.f32.mrb[3].mxu1 }
 0x24c   : > { %651 = vst [vmem:[%s1621_s14] sm:$0xff] %v635_v22  ;;  %v567_v26 = vadd.f32 %v1616_v16, %v566_v25 }
 0x24d   : > { %v638_v27 = vmax.f32 %v572_v24, 0.0 }
 0x24e   : > { %v637_v28 = vmax.f32 %v567_v26, 0.0  ;;  %v987_v29 = vpop.f32.mrb[4].mxu1 }
 0x24f   : > { %654 = vst [vmem:[%s1621_s14 + $0x18] sm:$0xff] %v638_v27  ;;  %v582_v30 = vadd.f32 %v987_v29, %v1616_v16  ;;  %v576_v31 = vpop.f32.mrb[5].mxu1 }
 0x250   : > { %653 = vst [vmem:[%s1621_s14 + $0x10] sm:$0xff] %v637_v28  ;;  %v577_v32 = vadd.f32 %v1616_v16, %v576_v31 }
 0x251   : > { %v640_v33 = vmax.f32 %v582_v30, 0.0 }
 0x252   : > { %v639_v34 = vmax.f32 %v577_v32, 0.0  ;;  %v990_v35 = vpop.f32.mrb[6].mxu1 }
 0x253   : > { %656 = vst [vmem:[%s1621_s14 + $0x28] sm:$0xff] %v640_v33  ;;  %v592_v36 = vadd.f32 %v990_v35, %v1616_v16  ;;  %v586_v37 = vpop.f32.mrb[7].mxu1 }
 0x254   : > { %655 = vst [vmem:[%s1621_s14 + $0x20] sm:$0xff] %v639_v34  ;;  %v587_v38 = vadd.f32 %v1616_v16, %v586_v37 }
 0x255   : > { %v642_v39 = vmax.f32 %v592_v36, 0.0 }
 0x256   : > { %v641_v40 = vmax.f32 %v587_v38, 0.0  ;;  %v993_v41 = vpop.f32.mrb[8].mxu1 }
 0x257   : > { %658 = vst [vmem:[%s1621_s14 + $0x38] sm:$0xff] %v642_v39  ;;  %v602_v42 = vadd.f32 %v993_v41, %v1616_v16  ;;  %v596_v43 = vpop.f32.mrb[9].mxu1 }
 0x258   : > { %657 = vst [vmem:[%s1621_s14 + $0x30] sm:$0xff] %v641_v40  ;;  %v597_v44 = vadd.f32 %v1616_v16, %v596_v43 }
 0x259   : > { %v644_v45 = vmax.f32 %v602_v42, 0.0 }
 0x25a   : > { %v643_v46 = vmax.f32 %v597_v44, 0.0  ;;  %v996_v47 = vpop.f32.mrb[10].mxu1 }
 0x25b   : > { %660 = vst [vmem:[%s1621_s14 + $0x48] sm:$0xff] %v644_v45  ;;  %v612_v48 = vadd.f32 %v996_v47, %v1616_v16  ;;  %v606_v49 = vpop.f32.mrb[11].mxu1 }
 0x25c   : > { %659 = vst [vmem:[%s1621_s14 + $0x40] sm:$0xff] %v643_v46  ;;  %v607_v50 = vadd.f32 %v1616_v16, %v606_v49 }
 0x25d   : > { %v646_v51 = vmax.f32 %v612_v48, 0.0 }
 0x25e   : > { %v645_v52 = vmax.f32 %v607_v50, 0.0  ;;  %v999_v53 = vpop.f32.mrb[12].mxu1 }
 0x25f   : > { %662 = vst [vmem:[%s1621_s14 + $0x58] sm:$0xff] %v646_v51  ;;  %v622_v54 = vadd.f32 %v999_v53, %v1616_v16  ;;  %v616_v55 = vpop.f32.mrb[13].mxu1 }
 0x260   : > { %661 = vst [vmem:[%s1621_s14 + $0x50] sm:$0xff] %v645_v52  ;;  %v617_v56 = vadd.f32 %v1616_v16, %v616_v55 }
 0x261   : > { %v648_v57 = vmax.f32 %v622_v54, 0.0 }
 0x262   : > { %v647_v58 = vmax.f32 %v617_v56, 0.0  ;;  %v1002_v59 = vpop.f32.mrb[14].mxu1 }
 0x263   : > { %664 = vst [vmem:[%s1621_s14 + $0x68] sm:$0xff] %v648_v57  ;;  %v632_v60 = vadd.f32 %v1002_v59, %v1616_v16  ;;  %v626_v61 = vpop.f32.mrb[15].mxu1 }
 0x264   : > { %663 = vst [vmem:[%s1621_s14 + $0x60] sm:$0xff] %v647_v58  ;;  %v627_v62 = vadd.f32 %v1616_v16, %v626_v61 }
 0x265   : > { %v650_v63 = vmax.f32 %v632_v60, 0.0 }
 0x266   : > { %v649_v0 = vmax.f32 %v627_v62, 0.0 }
 0x267   : > { %666 = vst [vmem:[%s1621_s14 + $0x78] sm:$0xff] %v650_v63 }
 0x268   : > { %665 = vst [vmem:[%s1621_s14 + $0x70] sm:$0xff] %v649_v0 }
 0x269   : > { %1250 = shalt.err (!%p1247_p8)
}
 0x26a   : > { %s1251_s8 = scalar_lea.hbm %s1656_s10, 2048  ;;  %s1255_s25 = scalar_lea.hbm %s1713_s4, 4096 }
 0x26b   : > { %p1252_p12 = scmp.ne.s32.totalorder %s1656_s10, %s1251_s8  ;;  %p1256_p6 = scmp.lt.u32.totalorder %s1656_s10, %s1713_s4 }
 0x26c   : > { %p1257_p13 = scmp.lt.u32.totalorder %s1255_s25, %s1251_s8  ;;  %p1259_p5 = scmp.lt.u32.totalorder %s1251_s8, %s1656_s10 }
 0x26d   : > { %p1253_p11 = pnand %p1252_p12, %p1457_p10 }
 0x26e   : > { %p1258_p0 = por %p1257_p13, %p1256_p6 }
 0x26f   : > { %p1254_p3 = pneg %p1253_p11 }
 0x270   : > { %p1260_p9 = por %p1259_p5, %p1258_p0 }
 0x272   : > { %p1261_p1 = pnand %p1260_p9, %p1254_p3 }
 0x274   : > { %1264 = shalt.err (!%p1261_p1)
}
 0x275   : > { %s1335_s21 = smov 128   ;;  %s1336_s23 = smov 8  }
 0x276   : > { %1075 = dma.vmem_to_hbm [thread:$0]  (%p1457_p10), %s1658_s26, 2048, %s1656_s10, %s668_s18, %s1335_s21, %s1335_s21, %s1336_s23  }
 0x277 PF: > { %s698_s14 = sand.u32 1, %s1307_s15   ;;  %p1741_p2 = scmp.ne.s32.totalorder %s1725_s24, 0 }
 0x278   : > { %p1742_p7 = scmp.ge.s32.totalorder %s1327_s20, 2  ;;  %s699_s30 = scalar_lea.sflag [#allocation4], %s698_s14 }
 0x27a   : > { %p1089_p4 = pnand %p1742_p7, %p1741_p2 }
 0x27c   : > { %1302 = dma.done.wait (!%p1089_p4), %s699_s30, 2048  }
 0x27d   : > { %1304 = vsyncadd (!%p1089_p4), %s699_s30, 4294965248  ;;  %s23_s20 = sadd.s32 1, %s1327_s20   ;;  %s1743_s28 = sld [smem:[#allocation13_spill]] }
 0x27e   : > { %p20_p8 = scmp.ge.s32.totalorder %s23_s20, 4   ;;  %s1744_s15 = smov %s1311_s16 }
 0x27f   : > { %s1745_s16 = smov %s1315_s17  ;;  %s1746_s17 = smov %s1466_s7 }
 0x280   : > { %s1747_s18 = smov %s1323_s19  ;;  %22 = sbr.rel (!%p20_p8) target bundleno = 11 (0xb), region = 98 }
 0x283   : > { %s1748_s19 = smov %s1743_s28 }
 0x287   :  { %704 = vsyncpa [#allocation3], 1 }
 0x288   :  { %706 = vsyncpa [#allocation3 + $0x1], 1 }
 0x289   :  { %707 = vsyncpa [#allocation6], 1 }
 0x28a   :  { %709 = vsyncpa [#allocation6 + $0x1], 1 }
 0x28b   :  { %710 = vsyncpa [#allocation4], 1 }
 0x28c   :  { %712 = vsyncpa [#allocation4 + $0x1], 1 }

</bundles_post_ra>
